<compile_context>
chip_gen: v5e
topology: v5e:2x2
jax: 0.10.0
libtpu: 0.0.40
codegen_flags: <defaults>
</compile_context>

<pallas_src>
import functools
import math

import jax
import jax.numpy as jnp
from jax.experimental import pallas as pl
from jax.experimental.pallas import tpu as pltpu

LANE = 128


def _round_up(v, m):
    return (v + m - 1) // m * m


# --------------------------------------------------------------------------
# Kernel 1: feature projection  out = x @ W  (row tiled over nodes).
# --------------------------------------------------------------------------
def _proj_kernel(x_ref, w_ref, o_ref):
    o_ref[...] = jnp.dot(
        x_ref[...], w_ref[...], preferred_element_type=jnp.float32
    ).astype(o_ref.dtype)


def _project(x, w, *, tm, out_dtype):
    n, c_in = x.shape
    c_out = w.shape[1]
    return pl.pallas_call(
        _proj_kernel,
        out_shape=jax.ShapeDtypeStruct((n, c_out), out_dtype),
        grid=(n // tm,),
        in_specs=[
            pl.BlockSpec((tm, c_in), lambda i: (i, 0)),
            pl.BlockSpec((c_in, c_out), lambda i: (0, 0)),
        ],
        out_specs=pl.BlockSpec((tm, c_out), lambda i: (i, 0)),
        compiler_params=pltpu.CompilerParams(
            dimension_semantics=("parallel",),
            vmem_limit_bytes=32 * 1024 * 1024,
        ),
    )(x, w)


# --------------------------------------------------------------------------
# Kernel 2: tiled adjacency matmul with K-accumulation:
#   out_tile = [relu](sum_k adj[i,k] @ dense[k,:] + bias)
# --------------------------------------------------------------------------
def _adj_matmul_kernel(adj_ref, d_ref, b_ref, o_ref, acc_ref, *, apply_relu):
    @pl.when(pl.program_id(1) == 0)
    def _():
        acc_ref[...] = jnp.zeros_like(acc_ref)

    acc_ref[...] += jnp.dot(
        adj_ref[...], d_ref[...], preferred_element_type=jnp.float32
    )

    @pl.when(pl.program_id(1) == pl.num_programs(1) - 1)
    def _():
        r = acc_ref[...] + b_ref[...]          # bias add fused on the acc tile
        if apply_relu:
            r = jnp.maximum(r, 0.0)            # ReLU fused (VPU, hidden under MXU)
        o_ref[...] = r.astype(o_ref.dtype)


def _adj_matmul(adj, dense, bias, *, tm, tk, apply_relu, out_dtype):
    n = adj.shape[0]
    c = dense.shape[1]
    kernel = functools.partial(_adj_matmul_kernel, apply_relu=apply_relu)
    return pl.pallas_call(
        kernel,
        out_shape=jax.ShapeDtypeStruct((n, c), out_dtype),
        grid=(n // tm, n // tk),
        in_specs=[
            pl.BlockSpec((tm, tk), lambda i, k: (i, k)),   # adj row/K tile
            pl.BlockSpec((tk, c), lambda i, k: (k, 0)),    # projected features
            pl.BlockSpec((1, c), lambda i, k: (0, 0)),     # bias (f32)
        ],
        out_specs=pl.BlockSpec((tm, c), lambda i, k: (i, 0)),
        scratch_shapes=[pltpu.VMEM((tm, c), jnp.float32)],
        compiler_params=pltpu.CompilerParams(
            dimension_semantics=("parallel", "arbitrary"),
            vmem_limit_bytes=32 * 1024 * 1024,
        ),
    )(adj, dense, bias)


# --------------------------------------------------------------------------
# Wrapper: build normalized adjacency (JAX glue), pad, run the two GCN layers.
# --------------------------------------------------------------------------
def gcn_encoder(x, edge_index, w1, b1, w2, b2, *, tm=128, tk=128,
                compute_dtype=jnp.bfloat16):
    n, _ = x.shape
    hidden = w1.shape[1]
    c_out = w2.shape[1]

    # Dense A with A[i, j] = 1 for edge j -> i, plus self loops.
    src, dst = edge_index[0], edge_index[1]
    adj = jnp.zeros((n, n), jnp.float32).at[dst, src].add(1.0)
    adj = adj + jnp.eye(n, dtype=jnp.float32)

    # Symmetric GCN normalization: D^{-1/2} (A + I) D^{-1/2}
    deg = adj.sum(axis=1)
    dinv = jnp.where(deg > 0, jax.lax.rsqrt(deg), 0.0)
    adj_hat = dinv[:, None] * adj * dinv[None, :]

    # Pad node dim to the tile lcm and channel dims to 128 lanes (lane-dense
    # stores); zero padding is exact (zero adj cols/rows, zero weight rows).
    n_pad = _round_up(n, (tm * tk) // math.gcd(tm, tk))
    h_pad = _round_up(hidden, LANE)
    o_pad = _round_up(c_out, LANE)

    adj_p = jnp.pad(adj_hat, ((0, n_pad - n), (0, n_pad - n))).astype(compute_dtype)
    x_p = jnp.pad(x, ((0, n_pad - n), (0, 0))).astype(compute_dtype)
    w1_p = jnp.pad(w1, ((0, 0), (0, h_pad - hidden))).astype(compute_dtype)
    b1_p = jnp.pad(b1.reshape(1, -1), ((0, 0), (0, h_pad - hidden))).astype(jnp.float32)
    w2_p = jnp.pad(w2, ((0, h_pad - hidden), (0, o_pad - c_out))).astype(compute_dtype)
    b2_p = jnp.pad(b2.reshape(1, -1), ((0, 0), (0, o_pad - c_out))).astype(jnp.float32)

    # Layer 1: h = relu(adj_hat @ (x @ W1) + b1)
    xw = _project(x_p, w1_p, tm=tm, out_dtype=compute_dtype)               # [Np, Hp]
    h = _adj_matmul(adj_p, xw, b1_p, tm=tm, tk=tk,
                    apply_relu=True, out_dtype=compute_dtype)              # [Np, Hp]

    # Layer 2: out = adj_hat @ (h @ W2) + b2
    hw = _project(h, w2_p, tm=tm, out_dtype=compute_dtype)                 # [Np, Op]
    out = _adj_matmul(adj_p, hw, b2_p, tm=tm, tk=tk,
                      apply_relu=False, out_dtype=jnp.float32)             # [Np, Op]

    return out[:n, :c_out]


if __name__ == "__main__":
    # Small shapes consistent with the module: N nodes, in=16, hidden=64, out=32.
    N, C_IN, HIDDEN, C_OUT = 8, 16, 64, 32

    key = jax.random.PRNGKey(0)
    kx, kw1, kw2, kb1, kb2 = jax.random.split(key, 5)

    x = jax.random.normal(kx, (N, C_IN), dtype=jnp.float32)

    # Deterministic ring graph (both directions) as edge_index [2, E].
    src = jnp.concatenate([jnp.arange(N), (jnp.arange(N) + 1) % N])
    dst = jnp.concatenate([(jnp.arange(N) + 1) % N, jnp.arange(N)])
    edge_index = jnp.stack([src, dst]).astype(jnp.int32)

    # Deterministic glorot-like parameter init (GCNConv: weight [Cin, Cout], bias [Cout]).
    def glorot(k, shape):
        fan_in, fan_out = shape
        s = jnp.sqrt(6.0 / (fan_in + fan_out))
        return jax.random.uniform(k, shape, jnp.float32, -s, s)

    w1 = glorot(kw1, (C_IN, HIDDEN))
    b1 = 0.01 * jax.random.normal(kb1, (1, HIDDEN), dtype=jnp.float32)
    w2 = glorot(kw2, (HIDDEN, C_OUT))
    b2 = 0.01 * jax.random.normal(kb2, (1, C_OUT), dtype=jnp.float32)

    out = gcn_encoder(x, edge_index, w1, b1, w2, b2)
    out = jax.block_until_ready(out)

    # Pure-JAX fp32 reference (kernel uses bf16 operands -> loosened tolerance).
    adj = jnp.zeros((N, N), jnp.float32).at[edge_index[1], edge_index[0]].add(1.0)
    adj = adj + jnp.eye(N, dtype=jnp.float32)
    deg = adj.sum(axis=1)
    dinv = jnp.where(deg > 0, jax.lax.rsqrt(deg), 0.0)
    adj_hat = dinv[:, None] * adj * dinv[None, :]
    h_ref = jnp.maximum(adj_hat @ (x @ w1) + b1, 0.0)
    out_ref = adj_hat @ (h_ref @ w2) + b2

    assert out.shape == (N, C_OUT)
    assert jnp.allclose(out, out_ref, atol=5e-2, rtol=5e-2), (
        float(jnp.max(jnp.abs(out - out_ref)))
    )

    print("KERNEL_OK")
</pallas_src>

<mosaic_0001>
module attributes {stable_mosaic.version = 11 : i64} {
  func.func @_proj_kernel(%arg0: i32, %arg1: memref<128x16xbf16, #tpu.memory_space<vmem>>, %arg2: memref<16x128xbf16, #tpu.memory_space<vmem>>, %arg3: memref<128x128xbf16, #tpu.memory_space<vmem>>) attributes {dimension_semantics = [#tpu.dimension_semantics<parallel>], iteration_bounds = array<i64: 1>, scalar_prefetch = 0 : i64, scratch_operands = 0 : i64, tpu.core_type = #tpu.core_type<tc>, window_params = [{transform_indices = @transform_0, window_bounds = array<i64: 128, 16>}, {pipeline_mode = #tpu.pipeline_mode<synchronous>, transform_indices = @transform_1, window_bounds = array<i64: 16, 128>}, {transform_indices = @transform_2, window_bounds = array<i64: 128, 128>}]} {
    %c0 = arith.constant 0 : index
    %c0_0 = arith.constant 0 : index
    %0 = vector.load %arg1[%c0, %c0_0] : memref<128x16xbf16, #tpu.memory_space<vmem>>, vector<128x16xbf16>
    %c0_1 = arith.constant 0 : index
    %c0_2 = arith.constant 0 : index
    %1 = vector.load %arg2[%c0_1, %c0_2] : memref<16x128xbf16, #tpu.memory_space<vmem>>, vector<16x128xbf16>
    %cst = arith.constant dense<0.000000e+00> : vector<128x128xf32>
    %2 = tpu.matmul %0, %1, %cst {dimension_numbers = #tpu.dot_dimension_numbers<[1], [0], [0], [1], [0, 0, 1, 1], [], []>} : vector<128x16xbf16>, vector<16x128xbf16>, vector<128x128xf32> -> vector<128x128xf32>
    %3 = arith.truncf %2 : vector<128x128xf32> to vector<128x128xbf16>
    %c0_3 = arith.constant 0 : index
    %c0_4 = arith.constant 0 : index
    %4 = vector.load %arg3[%c0_3, %c0_4] : memref<128x128xbf16, #tpu.memory_space<vmem>>, vector<128x128xbf16>
    tpu.vector_store %arg3[%c0_3, %c0_4], %3 {strides = array<i32>} : memref<128x128xbf16, #tpu.memory_space<vmem>>, vector<128x128xbf16>,
    return
  }
  func.func @transform_0(%arg0: i32) -> (i32, i32) {
    %c0_i32 = arith.constant 0 : i32
    %c0_i32_0 = arith.constant 0 : i32
    return %arg0, %c0_i32 : i32, i32
  }
  func.func @transform_1(%arg0: i32) -> (i32, i32) {
    %c0_i32 = arith.constant 0 : i32
    %c0_i32_0 = arith.constant 0 : i32
    %c0_i32_1 = arith.constant 0 : i32
    return %c0_i32, %c0_i32_0 : i32, i32
  }
  func.func @transform_2(%arg0: i32) -> (i32, i32) {
    %c0_i32 = arith.constant 0 : i32
    %c0_i32_0 = arith.constant 0 : i32
    return %arg0, %c0_i32 : i32, i32
  }
}

</mosaic_0001>

<bundles_post_ra>
// kernel: tpu_custom_call.1
= control target key start
LH: loop header
LB: loop body
LE: loop exit
PB: predicated region body
PF: predicated region fallthrough
CT: control target
= control target key end

     0   :  { %vm77_vm0 = vcmask 130048   ;;  %s389_s0 = inlined_call_operand.vmem [shape: bf16[128,16], index: 0, kind: input, shape index: {}]   ;;  %s390_s1 = inlined_call_operand.vmem [shape: bf16[16,128], index: 1, kind: input, shape index: {}]   ;;  %s391_s2 = inlined_call_operand.hbm [shape: bf16[128,128], index: 2, kind: output, shape index: {}]  }
   0x1   :  { %v253_v0 = vld [vmem:[%s390_s1] sm:$0xff]  ;;  %v247_v2 = vld [vmem:[%s389_s0 + $0x10] sm:$0xff] }
   0x2   :  { %v245_v1 = vld [vmem:[%s389_s0] sm:$0xff]  ;;  %109 = vmatpush.bf16.msra.mxu0 %v253_v0  ;;  %301 = vmatpush.bf16.msra.mxu1 %v253_v0  ;;  %v251_v4 = vld [vmem:[%s389_s0 + $0x30] sm:$0xff] }
   0x3   :  { %v249_v3 = vld [vmem:[%s389_s0 + $0x20] sm:$0xff]  ;;  %302 = vmatpush.bf16.msra.mxu2 %v253_v0  ;;  %303 = vmatpush.bf16.msra.mxu3 %v253_v0 }
   0x4   :  { %7 = vsyncpa [#allocation3], 0  ;;  %v246_v5 = vld [vmem:[%s389_s0 + $0x8] sm:$0xff]  ;;  %v248_v6 = vld [vmem:[%s389_s0 + $0x18] sm:$0xff]  ;;  %s189_s29 = sshll.u32 %s391_s2, 4  ;;  %s334_s30 = smov 64   ;;  %s190_s29 = int_to_ptr.hbm [resolvable:$true] %s189_s29 }
   0x5   :  { %237 = vmatmul.msk.bf16.vlgmr.msra.gmra.mxu0 %vm77_vm0, %v245_v1  ;;  %239 = vmatmul.msk.bf16.vlgmr.msra.gmra.mxu1 %vm77_vm0, %v247_v2  ;;  %v250_v7 = vld [vmem:[%s389_s0 + $0x28] sm:$0xff]  ;;  %v252_v8 = vld [vmem:[%s389_s0 + $0x38] sm:$0xff]  ;;  %s333_s0 = smov [#allocation2]   ;;  %s335_s3 = smov 4  }
   0x6   :  { %241 = vmatmul.msk.bf16.vlgmr.msra.gmra.mxu2 %vm77_vm0, %v249_v3  ;;  %243 = vmatmul.msk.bf16.vlgmr.msra.gmra.mxu3 %vm77_vm0, %v251_v4  ;;  %s187_s26 = sshll.u32 %s333_s0, 4  ;;  %s188_s26 = int_to_ptr.vmem [resolvable:$true] %s187_s26 }
  0x15   :  { %238 = vmatmul.msk.bf16.gmra.mxu0 %vm77_vm0, %v246_v5  ;;  %240 = vmatmul.msk.bf16.gmra.mxu1 %vm77_vm0, %v248_v6 }
  0x16   :  { %242 = vmatmul.msk.bf16.gmra.mxu2 %vm77_vm0, %v250_v7  ;;  %244 = vmatmul.msk.bf16.gmra.mxu3 %vm77_vm0, %v252_v8 }
  0x82   :  { %v111_v9 = vpop.f32.mrf.mxu0  ;;  %v121_v10 = vpop.f32.mrf.mxu1 }
  0x89   :  { %v131_v11 = vpop.f32.mrf.mxu2  ;;  %v141_v12 = vpop.f32.mrf.mxu3 }
  0x8a   :  { %v113_v13 = vpop.f32.mrf.mxu0  ;;  %v123_v14 = vpop.f32.mrf.mxu1 }
  0x8b   :  { %v257_v15 = vpack.c.bf16 %v113_v13, %v111_v9  ;;  %v267_v16 = vpack.c.bf16 %v123_v14, %v121_v10 }
  0x8d   :  { %258 = vst [vmem:[#allocation2] sm:$0xff] %v257_v15  }
  0x8e   :  { %295 = vst [vmem:[#allocation2 + $0x10] sm:$0xff] %v267_v16  }
  0x91   :  { %v133_v17 = vpop.f32.mrf.mxu2  ;;  %v143_v18 = vpop.f32.mrf.mxu3 }
  0x92   :  { %v277_v19 = vpack.c.bf16 %v133_v17, %v131_v11  ;;  %v287_v20 = vpack.c.bf16 %v143_v18, %v141_v12  ;;  %v116_v21 = vpop.f32.mrf.mxu0  ;;  %v126_v22 = vpop.f32.mrf.mxu1 }
  0x94   :  { %297 = vst [vmem:[#allocation2 + $0x20] sm:$0xff] %v277_v19  }
  0x95   :  { %299 = vst [vmem:[#allocation2 + $0x30] sm:$0xff] %v287_v20  }
  0x99   :  { %v136_v23 = vpop.f32.mrf.mxu2  ;;  %v146_v24 = vpop.f32.mrf.mxu3 }
  0x9a   :  { %v118_v25 = vpop.f32.mrf.mxu0  ;;  %v128_v26 = vpop.f32.mrf.mxu1 }
  0x9b   :  { %v262_v27 = vpack.c.bf16 %v118_v25, %v116_v21  ;;  %v272_v28 = vpack.c.bf16 %v128_v26, %v126_v22 }
  0x9d   :  { %294 = vst [vmem:[#allocation2 + $0x8] sm:$0xff] %v262_v27  }
  0x9e   :  { %296 = vst [vmem:[#allocation2 + $0x18] sm:$0xff] %v272_v28  }
  0xa1   :  { %v138_v29 = vpop.f32.mrf.mxu2  ;;  %v148_v30 = vpop.f32.mrf.mxu3 }
  0xa2   :  { %v282_v31 = vpack.c.bf16 %v138_v29, %v136_v23  ;;  %v292_v32 = vpack.c.bf16 %v148_v30, %v146_v24 }
  0xa4   :  { %298 = vst [vmem:[#allocation2 + $0x28] sm:$0xff] %v282_v31  }
  0xa5   :  { %300 = vst [vmem:[#allocation2 + $0x38] sm:$0xff] %v292_v32  }
  0xa6   :  { %195 = dma.vmem_to_hbm [thread:$0]  %s188_s26, 1024, %s190_s29, [#allocation3], %s334_s30, %s334_s30, %s335_s3  }
  0xa7   :  { %331 = dma.done.wait [#allocation3], 1024  }
  0xa8   :  { %332 = vsyncadd [#allocation3], 4294966272 }
  0xa9   :  { %200 = vsyncpa [#allocation3], 1 }

</bundles_post_ra>
